<compile_context>
chip_gen: v7x
topology: tpu7x:2x2x1
jax: 0.10.0
libtpu: 0.0.40
codegen_flags: <defaults>
</compile_context>

<pallas_src>
import jax
import jax.numpy as jnp
import numpy as np
from jax.experimental import pallas as pl
from jax.experimental.pallas import tpu as pltpu

EPS = 1e-5
MAXPAD = 4          # largest spatial padding across branches (dilation=4)
DILATIONS = (1, 2, 4)


def _tap_offsets():
    """25 unique (dh, dw) tap offsets: shared center + 8 ring taps per dilation."""
    taps = [(0, 0)]
    for d in DILATIONS:
        for dh in (-1, 0, 1):
            for dw in (-1, 0, 1):
                if dh == 0 and dw == 0:
                    continue
                taps.append((dh * d, dw * d))
    return taps


def _inception_kernel(p_ref, w_ref, gb_ref, o_ref):
    """Fused 4-branch conv + batch-stat BN + ReLU.

    p_ref : (K_pad, NHW)  im2col patches (tap-major, then Cin), zero-padded K
    w_ref : (4F, K_pad)   fused weights (rows = output channels in concat order)
    gb_ref: (4F, 2)       column 0 = gamma, column 1 = beta
    o_ref : (4F, NHW)     lane-dense output slab (NHW multiple of 128)
    """
    # Single MXU matmul for all four branches: (4F, K) x (K, NHW) -> (4F, NHW).
    acc = jnp.dot(w_ref[...], p_ref[...], preferred_element_type=jnp.float32)

    # BatchNorm with batch statistics: per-channel (per-row) lane reductions.
    mean = jnp.mean(acc, axis=-1, keepdims=True)                  # (4F, 1)
    var = jnp.mean((acc - mean) ** 2, axis=-1, keepdims=True)     # (4F, 1)
    gamma = gb_ref[:, 0:1]                                        # (4F, 1)
    beta = gb_ref[:, 1:2]                                         # (4F, 1)
    y = (acc - mean) * jax.lax.rsqrt(var + EPS) * gamma + beta
    o_ref[...] = jnp.maximum(y, 0.0)                              # ReLU


def dilation_inception_forward(x_nchw, params):
    """x_nchw: (N, Cin, H, W) float32 -> (N, 4*fnum, H, W) float32."""
    N, Cin, H, W = x_nchw.shape
    F = params["w1"].shape[-1]
    taps = _tap_offsets()
    T = len(taps)                       # 25 unique dilated taps
    K = T * Cin
    K_pad = -(-K // 8) * 8              # round up to sublane multiple
    NHW = N * H * W

    # ---- layout plumbing (no arithmetic): im2col + fused weight packing ----
    x_f = x_nchw.astype(jnp.float32)
    x_pad = jnp.pad(x_f, ((0, 0), (0, 0), (MAXPAD, MAXPAD), (MAXPAD, MAXPAD)))
    slabs = [x_pad[:, :, MAXPAD + dh:MAXPAD + dh + H,
                   MAXPAD + dw:MAXPAD + dw + W]                  # (N, Cin, H, W)
             for (dh, dw) in taps]
    patches = jnp.stack(slabs, axis=0)                           # (T, N, Cin, H, W)
    patches = jnp.transpose(patches, (0, 2, 1, 3, 4)).reshape(K, NHW)
    patches = jnp.pad(patches, ((0, K_pad - K), (0, 0)))         # (K_pad, NHW)

    # Fused weight matrix: rows = concat([branch1, branch2, branch3, branch4]).
    tap_idx = {off: t for t, off in enumerate(taps)}
    wt = jnp.zeros((4 * F, K_pad), jnp.float32)
    wt = wt.at[0:F, 0:Cin].set(params["w1"][0, 0].T)             # 1x1 -> center tap
    for bi, (name, d) in enumerate((("2", 1), ("3", 2), ("4", 4)), start=1):
        w = params["w" + name]                                   # (3, 3, Cin, F)
        for kh in range(3):
            for kw in range(3):
                t = tap_idx[((kh - 1) * d, (kw - 1) * d)]
                wt = wt.at[bi * F:(bi + 1) * F,
                           t * Cin:(t + 1) * Cin].set(w[kh, kw].T)

    gamma = jnp.concatenate([params["g" + k][0] for k in "1234"])  # (4F,)
    beta = jnp.concatenate([params["t" + k][0] for k in "1234"])   # (4F,)
    gb = jnp.stack([gamma, beta], axis=1)                          # (4F, 2)
    # NOTE: conv biases b1..b4 cancel exactly under batch-statistics BatchNorm,
    # so they are intentionally not passed into the kernel.

    out = pl.pallas_call(
        _inception_kernel,
        grid=(1,),  # toy problem: one program, whole arrays as blocks
        in_specs=[
            pl.BlockSpec((K_pad, NHW), lambda i: (0, 0)),
            pl.BlockSpec((4 * F, K_pad), lambda i: (0, 0)),
            pl.BlockSpec((4 * F, 2), lambda i: (0, 0)),
        ],
        out_specs=pl.BlockSpec((4 * F, NHW), lambda i: (0, 0)),
        out_shape=jax.ShapeDtypeStruct((4 * F, NHW), jnp.float32),
        compiler_params=pltpu.CompilerParams(
            dimension_semantics=("arbitrary",)),
    )(patches, wt, gb)

    # (4F, N*H*W) -> (N, 4F, H, W): NCHW with channels in torch.cat order.
    return jnp.transpose(out.reshape(4 * F, N, H, W), (1, 0, 2, 3))


def init_params(key, inplanes, planes):
    """Deterministic parameter init mirroring the PyTorch module's shapes."""
    fnum = planes // 4
    ks = jax.random.split(key, 16)
    params = {}
    specs = [("1", 1, 1), ("2", 3, 3), ("3", 3, 3), ("4", 3, 3)]
    i = 0
    for name, kh, kw in specs:
        fan_in = inplanes * kh * kw
        bound = 1.0 / np.sqrt(fan_in)
        params["w" + name] = jax.random.uniform(
            ks[i], (kh, kw, inplanes, fnum), jnp.float32, -bound, bound); i += 1
        params["b" + name] = jax.random.uniform(
            ks[i], (1, fnum), jnp.float32, -bound, bound); i += 1
        params["g" + name] = 1.0 + 0.1 * jax.random.normal(
            ks[i], (1, fnum), jnp.float32); i += 1
        params["t" + name] = 0.1 * jax.random.normal(
            ks[i], (1, fnum), jnp.float32); i += 1
    return params


def ref_forward(x_nchw, params):
    """Pure-JAX reference (mirrors the PyTorch forward, incl. conv bias)."""
    outs = []
    cfgs = [("1", 0, 1), ("2", 1, 1), ("3", 2, 2), ("4", 4, 4)]
    x = x_nchw.astype(jnp.float32)
    for name, pad, dil in cfgs:
        w_oihw = jnp.transpose(params["w" + name], (3, 2, 0, 1))
        y = jax.lax.conv_general_dilated(
            x, w_oihw, window_strides=(1, 1),
            padding=((pad, pad), (pad, pad)),
            rhs_dilation=(dil, dil),
            dimension_numbers=("NCHW", "OIHW", "NCHW"))
        y = y + params["b" + name][0].reshape(1, -1, 1, 1)
        mean = jnp.mean(y, axis=(0, 2, 3), keepdims=True)
        var = jnp.mean((y - mean) ** 2, axis=(0, 2, 3), keepdims=True)
        y = (y - mean) * jax.lax.rsqrt(var + EPS)
        y = y * params["g" + name][0].reshape(1, -1, 1, 1) \
              + params["t" + name][0].reshape(1, -1, 1, 1)
        outs.append(jnp.maximum(y, 0.0))
    return jnp.concatenate(outs, axis=1)


if __name__ == "__main__":
    key = jax.random.PRNGKey(0)
    kx, kp = jax.random.split(key)

    # Small shapes consistent with the module: inplanes=4, planes=8 (fnum=2).
    N, Cin, H, W = 2, 4, 16, 16
    planes = 8

    x = jax.random.normal(kx, (N, Cin, H, W), jnp.float32)
    params = init_params(kp, Cin, planes)

    out = dilation_inception_forward(x, params)
    out = jax.block_until_ready(out)

    ref = jax.block_until_ready(ref_forward(x, params))
    assert out.shape == (N, planes, H, W), out.shape
    np.testing.assert_allclose(np.asarray(out), np.asarray(ref),
                               atol=1e-2, rtol=1e-2)
    print("KERNEL_OK")
</pallas_src>

<mosaic_0001>
module attributes {stable_mosaic.version = 11 : i64} {
  func.func @_inception_kernel(%arg0: i32, %arg1: memref<104x512xf32, #tpu.memory_space<vmem>>, %arg2: memref<8x104xf32, #tpu.memory_space<vmem>>, %arg3: memref<8x2xf32, #tpu.memory_space<vmem>>, %arg4: memref<8x512xf32, #tpu.memory_space<vmem>>) attributes {dimension_semantics = [#tpu.dimension_semantics<arbitrary>], iteration_bounds = array<i64: 1>, scalar_prefetch = 0 : i64, scratch_operands = 0 : i64, tpu.core_type = #tpu.core_type<tc>, window_params = [{pipeline_mode = #tpu.pipeline_mode<synchronous>, transform_indices = @transform_0, window_bounds = array<i64: 104, 512>}, {pipeline_mode = #tpu.pipeline_mode<synchronous>, transform_indices = @transform_1, window_bounds = array<i64: 8, 104>}, {pipeline_mode = #tpu.pipeline_mode<synchronous>, transform_indices = @transform_2, window_bounds = array<i64: 8, 2>}, {pipeline_mode = #tpu.pipeline_mode<synchronous>, transform_indices = @transform_3, window_bounds = array<i64: 8, 512>}]} {
    %c0 = arith.constant 0 : index
    %c0_0 = arith.constant 0 : index
    %0 = vector.load %arg2[%c0, %c0_0] : memref<8x104xf32, #tpu.memory_space<vmem>>, vector<8x104xf32>
    %c0_1 = arith.constant 0 : index
    %c0_2 = arith.constant 0 : index
    %1 = vector.load %arg1[%c0_1, %c0_2] : memref<104x512xf32, #tpu.memory_space<vmem>>, vector<104x512xf32>
    %cst = arith.constant dense<0.000000e+00> : vector<8x512xf32>
    %2 = tpu.matmul %0, %1, %cst {dimension_numbers = #tpu.dot_dimension_numbers<[1], [0], [0], [1], [0, 0, 1, 1], [], []>} : vector<8x104xf32>, vector<104x512xf32>, vector<8x512xf32> -> vector<8x512xf32>
    %cst_3 = arith.constant dense<0.000000e+00> : vector<8xf32>
    %3 = vector.multi_reduction <add>, %2, %cst_3 [1] : vector<8x512xf32> to vector<8xf32>
    %4 = vector.shape_cast %3 : vector<8xf32> to vector<8x1xf32>
    %cst_4 = arith.constant 5.120000e+02 : f32
    %5 = vector.broadcast %cst_4 : f32 to vector<8x1xf32>
    %6 = arith.divf %4, %5 : vector<8x1xf32>
    %7 = vector.broadcast %6 : vector<8x1xf32> to vector<8x512xf32>
    %8 = arith.subf %2, %7 : vector<8x512xf32>
    %9 = arith.mulf %8, %8 : vector<8x512xf32>
    %cst_5 = arith.constant dense<0.000000e+00> : vector<8xf32>
    %10 = vector.multi_reduction <add>, %9, %cst_5 [1] : vector<8x512xf32> to vector<8xf32>
    %11 = vector.shape_cast %10 : vector<8xf32> to vector<8x1xf32>
    %cst_6 = arith.constant 5.120000e+02 : f32
    %12 = vector.broadcast %cst_6 : f32 to vector<8x1xf32>
    %13 = arith.divf %11, %12 : vector<8x1xf32>
    %c0_7 = arith.constant 0 : index
    %c0_8 = arith.constant 0 : index
    %14 = vector.load %arg3[%c0_7, %c0_8] : memref<8x2xf32, #tpu.memory_space<vmem>>, vector<8x1xf32>
    %c0_9 = arith.constant 0 : index
    %c1 = arith.constant 1 : index
    %15 = vector.load %arg3[%c0_9, %c1] : memref<8x2xf32, #tpu.memory_space<vmem>>, vector<8x1xf32>
    %16 = vector.broadcast %6 : vector<8x1xf32> to vector<8x512xf32>
    %17 = arith.subf %2, %16 : vector<8x512xf32>
    %cst_10 = arith.constant 9.99999974E-6 : f32
    %18 = vector.broadcast %cst_10 : f32 to vector<8x1xf32>
    %19 = arith.addf %13, %18 : vector<8x1xf32>
    %20 = math.rsqrt %19 : vector<8x1xf32>
    %21 = vector.broadcast %20 : vector<8x1xf32> to vector<8x512xf32>
    %22 = arith.mulf %17, %21 : vector<8x512xf32>
    %23 = vector.broadcast %14 : vector<8x1xf32> to vector<8x512xf32>
    %24 = arith.mulf %22, %23 : vector<8x512xf32>
    %25 = vector.broadcast %15 : vector<8x1xf32> to vector<8x512xf32>
    %26 = arith.addf %24, %25 : vector<8x512xf32>
    %cst_11 = arith.constant 0.000000e+00 : f32
    %27 = vector.broadcast %cst_11 : f32 to vector<8x512xf32>
    %28 = arith.maximumf %26, %27 : vector<8x512xf32>
    %c0_12 = arith.constant 0 : index
    %c0_13 = arith.constant 0 : index
    %29 = vector.load %arg4[%c0_12, %c0_13] : memref<8x512xf32, #tpu.memory_space<vmem>>, vector<8x512xf32>
    tpu.vector_store %arg4[%c0_12, %c0_13], %28 {strides = array<i32>} : memref<8x512xf32, #tpu.memory_space<vmem>>, vector<8x512xf32>,
    return
  }
  func.func @transform_0(%arg0: i32) -> (i32, i32) {
    %c0_i32 = arith.constant 0 : i32
    %c0_i32_0 = arith.constant 0 : i32
    %c0_i32_1 = arith.constant 0 : i32
    return %c0_i32, %c0_i32_0 : i32, i32
  }
  func.func @transform_1(%arg0: i32) -> (i32, i32) {
    %c0_i32 = arith.constant 0 : i32
    %c0_i32_0 = arith.constant 0 : i32
    %c0_i32_1 = arith.constant 0 : i32
    return %c0_i32, %c0_i32_0 : i32, i32
  }
  func.func @transform_2(%arg0: i32) -> (i32, i32) {
    %c0_i32 = arith.constant 0 : i32
    %c0_i32_0 = arith.constant 0 : i32
    %c0_i32_1 = arith.constant 0 : i32
    return %c0_i32, %c0_i32_0 : i32, i32
  }
  func.func @transform_3(%arg0: i32) -> (i32, i32) {
    %c0_i32 = arith.constant 0 : i32
    %c0_i32_0 = arith.constant 0 : i32
    %c0_i32_1 = arith.constant 0 : i32
    return %c0_i32, %c0_i32_0 : i32, i32
  }
}

</mosaic_0001>

<bundles_post_ra>
// kernel: tpu_custom_call.1
= control target key start
LH: loop header
LB: loop body
LE: loop exit
PB: predicated region body
PF: predicated region fallthrough
CT: control target
= control target key end

     0   :  { %8 = vsyncpa [#allocation3], 0  ;;  %s463_s0 = inlined_call_operand.hbm [shape: f32[104,512], index: 0, kind: input, shape index: {}]   ;;  %s464_s1 = inlined_call_operand.vmem [shape: f32[8,104], index: 1, kind: input, shape index: {}]   ;;  %s465_s2 = inlined_call_operand.vmem [shape: f32[8,2], index: 2, kind: input, shape index: {}]   ;;  %s466_s3 = inlined_call_operand.hbm [shape: f32[8,512], index: 3, kind: output, shape index: {}]  }
   0x1   :  { %9 = vsyncpa [#allocation4], 0  ;;  %s406_s12 = smov [#allocation2]   ;;  %s358_s16 = scalar_lea.hbm %s463_s0, 6656 }
   0x2   :  { %s15_s13 = sshll.u32 %s406_s12, 4  ;;  %p359_p0 = scmp.ne.s32.totalorder %s463_s0, %s358_s16  ;;  %s16_s13 = int_to_ptr.vmem [resolvable:$true] %s15_s13 }
   0x3   :  { %p362_p1 = scmp.lt.u32.totalorder %s358_s16, %s463_s0 }
   0x5   :  { %p364_p2 = pnand %p362_p1, %p359_p0 }
   0x7   :  { %367 = shalt.err (!%p364_p2)
}
   0x8   :  { %s368_s21 = scalar_lea.vmem %s16_s13, 6656  ;;  %p373_p4 = scmp.lt.s32.totalorder %s16_s13, %s16_s13 }
   0x9   :  { %p369_p3 = scmp.ne.s32.totalorder %s16_s13, %s368_s21  ;;  %p374_p5 = scmp.lt.s32.totalorder %s368_s21, %s368_s21 }
   0xb   :  { %p375_p6 = por %p374_p5, %p373_p4 }
   0xd   :  { %p376_p7 = pnand %p375_p6, %p369_p3 }
   0xf   :  { %379 = shalt.err (!%p376_p7)
}
  0x10   :  { %s407_s22 = smov 512   ;;  %s408_s23 = smov 32  }
  0x11   :  { %21 = dma.hbm_to_vmem [thread:$0]  %s463_s0, 6656, %s16_s13, [#allocation3], %s407_s22, %s407_s22, %s408_s23  }
  0x12   :  { %402 = dma.done.wait [#allocation3], 6656  }
  0x13   :  { %403 = vsyncadd [#allocation3], 4294960640  ;;  %v409_v0 = vmov 0.0   ;;  %v31_v1 = vld [vmem:[#allocation2 + $0x8] sm:$0xff]  ;;  %v30_v3 = vld [vmem:[#allocation2] sm:$0xff]  ;;  %vm82_vm0 = vcmask 850944  }
  0x14   :  { %150 = vmatprep.mubr.f32.mxu0 %v409_v0  ;;  %221 = vmatprep.mubr.f32.mxu1 %v409_v0  ;;  %v35_v2 = vld [vmem:[#allocation2 + $0x28] sm:$0xff]  ;;  %v34_v5 = vld [vmem:[#allocation2 + $0x20] sm:$0xff]  ;;  %v33_v6 = vld [vmem:[#allocation2 + $0x18] sm:$0xff] }
  0x15   :  { %v298_v4 = vpack.c.bf16 %v35_v2, %v31_v1  ;;  %v37_v7 = vld [vmem:[#allocation2 + $0x38] sm:$0xff]  ;;  %v300_v8 = vpack.c.bf16 %v34_v5, %v30_v3  ;;  %v32_v10 = vld [vmem:[#allocation2 + $0x10] sm:$0xff]  ;;  %v39_v12 = vld [vmem:[#allocation2 + $0x48] sm:$0xff] }
  0x16   :  { %v322_v9 = vpack.c.bf16 %v37_v7, %v33_v6  ;;  %v36_v11 = vld [vmem:[#allocation2 + $0x30] sm:$0xff]  ;;  %v43_v14 = vld [vmem:[#allocation2 + $0x68] sm:$0xff]  ;;  %v38_v15 = vld [vmem:[#allocation2 + $0x40] sm:$0xff] }
  0x17   :  { %299 = vmatprep.subr.bf16.mxu0 %v298_v4  ;;  %v324_v13 = vpack.c.bf16 %v36_v11, %v32_v10  ;;  %v42_v16 = vld [vmem:[#allocation2 + $0x60] sm:$0xff]  ;;  %v302_v17 = vpack.c.bf16 %v43_v14, %v39_v12  ;;  %v41_v19 = vld [vmem:[#allocation2 + $0x58] sm:$0xff]  ;;  %v40_v21 = vld [vmem:[#allocation2 + $0x50] sm:$0xff] }
  0x18   :  { %301 = vmatpush1.bf16.msra.mxu0 %v300_v8  ;;  %323 = vmatprep.subr.bf16.mxu1 %v322_v9  ;;  %v304_v18 = vpack.c.bf16 %v42_v16, %v38_v15  ;;  %v45_v20 = vld [vmem:[#allocation2 + $0x78] sm:$0xff]  ;;  %v44_v23 = vld [vmem:[#allocation2 + $0x70] sm:$0xff]  ;;  %v47_v24 = vld [vmem:[#allocation2 + $0x88] sm:$0xff] }
  0x19   :  { %325 = vmatpush1.bf16.msra.mxu1 %v324_v13  ;;  %v326_v22 = vpack.c.bf16 %v45_v20, %v41_v19  ;;  %v51_v25 = vld [vmem:[#allocation2 + $0xa8] sm:$0xff]  ;;  %303 = vmatprep.subr.bf16.mxu0 %v302_v17  ;;  %v328_v26 = vpack.c.bf16 %v44_v23, %v40_v21  ;;  %v46_v28 = vld [vmem:[#allocation2 + $0x80] sm:$0xff]  ;;  %v49_v30 = vld [vmem:[#allocation2 + $0x98] sm:$0xff]  ;;  %v411_v23 = vmov 1  }
  0x1a   :  { %v306_v27 = vpack.c.bf16 %v51_v25, %v47_v24  ;;  %v50_v29 = vld [vmem:[#allocation2 + $0xa0] sm:$0xff]  ;;  %v53_v31 = vld [vmem:[#allocation2 + $0xb8] sm:$0xff]  ;;  %v48_v32 = vld [vmem:[#allocation2 + $0x90] sm:$0xff]  ;;  %355 = vset.pattern.permute.xlu0 %v411_v23 }
  0x1b   :  { %327 = vmatprep.subr.bf16.mxu1 %v326_v22  ;;  %v52_v33 = vld [vmem:[#allocation2 + $0xb0] sm:$0xff]  ;;  %v308_v34 = vpack.c.bf16 %v50_v29, %v46_v28  ;;  %v330_v35 = vpack.c.bf16 %v53_v31, %v49_v30  ;;  %v55_v36 = vld [vmem:[#allocation2 + $0xc8] sm:$0xff]  ;;  %v54_v38 = vld [vmem:[#allocation2 + $0xc0] sm:$0xff]  ;;  %v410_v22 = vmov 0  }
  0x1c   :  { %305 = vmatpush1.bf16.msra.mxu0 %v304_v18  ;;  %v59_v37 = vld [vmem:[#allocation2 + $0xe8] sm:$0xff]  ;;  %v332_v39 = vpack.c.bf16 %v52_v33, %v48_v32  ;;  %v58_v41 = vld [vmem:[#allocation2 + $0xe0] sm:$0xff]  ;;  %v57_v42 = vld [vmem:[#allocation2 + $0xd8] sm:$0xff]  ;;  %353 = vset.pattern.permute.xlu1 %v410_v22 }
  0x1d   :  { %329 = vmatpush1.bf16.msra.mxu1 %v328_v26  ;;  %307 = vmatprep.subr.bf16.mxu0 %v306_v27  ;;  %v310_v40 = vpack.c.bf16 %v59_v37, %v55_v36  ;;  %v61_v43 = vld [vmem:[#allocation2 + $0xf8] sm:$0xff]  ;;  %v56_v45 = vld [vmem:[#allocation2 + $0xd0] sm:$0xff]  ;;  %v63_v47 = vld [vmem:[#allocation2 + $0x108] sm:$0xff]  ;;  %v312_v49 = vpack.c.bf16 %v58_v41, %v54_v38 }
  0x1e   :  { %331 = vmatprep.subr.bf16.mxu1 %v330_v35  ;;  %v334_v44 = vpack.c.bf16 %v61_v43, %v57_v42  ;;  %v60_v46 = vld [vmem:[#allocation2 + $0xf0] sm:$0xff]  ;;  %v67_v48 = vld [vmem:[#allocation2 + $0x128] sm:$0xff]  ;;  %v65_v50 = vld [vmem:[#allocation2 + $0x118] sm:$0xff] }
  0x1f   :  { %v69_v51 = vld [vmem:[#allocation2 + $0x138] sm:$0xff]  ;;  %v336_v52 = vpack.c.bf16 %v60_v46, %v56_v45  ;;  %v314_v53 = vpack.c.bf16 %v67_v48, %v63_v47  ;;  %v62_v54 = vld [vmem:[#allocation2 + $0x100] sm:$0xff]  ;;  %v64_v56 = vld [vmem:[#allocation2 + $0x110] sm:$0xff] }
  0x20   :  { %309 = vmatpush1.bf16.msra.mxu0 %v308_v34  ;;  %v66_v55 = vld [vmem:[#allocation2 + $0x120] sm:$0xff]  ;;  %v338_v57 = vpack.c.bf16 %v69_v51, %v65_v50  ;;  %v68_v58 = vld [vmem:[#allocation2 + $0x130] sm:$0xff]  ;;  %v71_v59 = vld [vmem:[#allocation2 + $0x148] sm:$0xff] }
  0x21   :  { %333 = vmatpush1.bf16.msra.mxu1 %v332_v39  ;;  %311 = vmatprep.subr.bf16.mxu0 %v310_v40  ;;  %v75_v60 = vld [vmem:[#allocation2 + $0x168] sm:$0xff]  ;;  %v73_v61 = vld [vmem:[#allocation2 + $0x158] sm:$0xff]  ;;  %v316_v63 = vpack.c.bf16 %v66_v55, %v62_v54  ;;  %v340_v0 = vpack.c.bf16 %v68_v58, %v64_v56  ;;  %v70_v2 = vld [vmem:[#allocation2 + $0x140] sm:$0xff] }
  0x22   :  { %335 = vmatprep.subr.bf16.mxu1 %v334_v44  ;;  %v77_v62 = vld [vmem:[#allocation2 + $0x178] sm:$0xff]  ;;  %v318_v1 = vpack.c.bf16 %v75_v60, %v71_v59  ;;  %v74_v3 = vld [vmem:[#allocation2 + $0x160] sm:$0xff]  ;;  %v72_v5 = vld [vmem:[#allocation2 + $0x150] sm:$0xff] }
  0x23   :  { %v342_v4 = vpack.c.bf16 %v77_v62, %v73_v61  ;;  %v76_v6 = vld [vmem:[#allocation2 + $0x170] sm:$0xff]  ;;  %v320_v7 = vpack.c.bf16 %v74_v3, %v70_v2  ;;  %v79_v9 = vld [vmem:[#allocation2 + $0x188] sm:$0xff]  ;;  %v81_v10 = vld [vmem:[#allocation2 + $0x198] sm:$0xff] }
  0x24   :  { %313 = vmatpush1.bf16.msra.mxu0 %v312_v49  ;;  %v344_v8 = vpack.c.bf16 %v76_v6, %v72_v5  ;;  %v78_v11 = vld [vmem:[#allocation2 + $0x180] sm:$0xff]  ;;  %v80_v13 = vld [vmem:[#allocation2 + $0x190] sm:$0xff] }
  0x25   :  { %337 = vmatpush1.bf16.msra.mxu1 %v336_v52  ;;  %315 = vmatprep.subr.bf16.mxu0 %v314_v53  ;;  %v29_v12 = vld [vmem:[%s464_s1] sm:$0xff]  ;;  %s412_s1 = smov [#allocation5]  }
  0x26   :  { %339 = vmatprep.subr.bf16.mxu1 %v338_v57  ;;  %v249_v21 = vld [vmem:[%s465_s2] sm:$0xff]  ;;  %s287_s2 = sshll.u32 %s412_s1, 4  ;;  %s288_s2 = int_to_ptr.vmem [resolvable:$true] %s287_s2 }
  0x27   :  { %258 = vperm.xlu1 %353, %v249_v21   ;;  %s380_s29 = scalar_lea.vmem %s288_s2, 512  ;;  %p385_p9 = scmp.lt.s32.totalorder %s288_s2, %s288_s2 }
  0x28   :  { %317 = vmatpush1.bf16.msra.mxu0 %v316_v63  ;;  %p381_p8 = scmp.ne.s32.totalorder %s288_s2, %s380_s29  ;;  %p386_p10 = scmp.lt.s32.totalorder %s380_s29, %s380_s29 }
  0x29   :  { %341 = vmatpush1.bf16.msra.mxu1 %v340_v0  ;;  %319 = vmatprep.subr.bf16.mxu0 %v318_v1 }
  0x2a   :  { %343 = vmatprep.subr.bf16.mxu1 %v342_v4  ;;  %p387_p11 = por %p386_p10, %p385_p9 }
  0x2b   :  { %354 = vset.pattern.permute.xlu1 %v411_v23 }
  0x2c   :  { %321 = vmatpush1.bf16.msra.mxu0 %v320_v7  ;;  %266 = vperm.xlu1 %354, %v249_v21   ;;  %p388_p12 = pnand %p387_p11, %p381_p8 }
  0x2d   :  { %345 = vmatpush1.bf16.msra.mxu1 %v344_v8  ;;  %110 = vmatprep.subr.mxu0 %v79_v9 }
  0x2e   :  { %181 = vmatprep.subr.mxu1 %v81_v10 }
  0x30   :  { %111 = vmatpush1.msra.mxu0 %v78_v11 }
  0x31   :  { %296 = vmatmul.mubr.msk.f32.vlgmr.msra.gmra.mrb[0].mxu0 %vm82_vm0, %v29_v12  ;;  %182 = vmatpush1.msra.mxu1 %v80_v13 }
  0x32   :  { %297 = vmatmul.mubr.msk.f32.vlgmr.msra.gmra.mrb[0].mxu1 %vm82_vm0, %v29_v12 }
  0xa6   :  { %v259_v40 = vpop.permute.xlu1 %258 }
  0xab   :  { %v267_v46 = vpop.permute.xlu1 %266 }
 0x104   :  { %v152_v14 = vpop.f32.mrb[0].mxu0 }
 0x105   :  { %v154_v15 = vpop.f32.mrb[1].mxu0  ;;  %v223_v16 = vpop.f32.mrb[0].mxu1 }
 0x106   :  { %v228_v17 = vadd.f32 %v154_v15, %v152_v14  ;;  %v225_v18 = vpop.f32.mrb[1].mxu1 }
 0x108   :  { %v229_v19 = vadd.f32 %v228_v17, %v223_v16 }
 0x10a   :  { %v230_v20 = vadd.f32 %v229_v19, %v225_v18 }
 0x10c   :  { %231 = vadd.xlane.f32.xlu0 %v230_v20 }
 0x199   :  { %v232_v24 = vpop.xlane.xlu0 %231 }
 0x19a   :  { %v234_v25 = vmul.f32 0.001953125, %v232_v24 }
 0x19c   :  { %v235_v26 = vsub.f32 %v152_v14, %v234_v25  ;;  %v236_v27 = vsub.f32 %v154_v15, %v234_v25  ;;  %v237_v28 = vsub.f32 %v223_v16, %v234_v25  ;;  %v238_v29 = vsub.f32 %v225_v18, %v234_v25 }
 0x19e   :  { %v239_v30 = vmul.f32 %v235_v26, %v235_v26  ;;  %v240_v31 = vmul.f32 %v236_v27, %v236_v27  ;;  %v241_v32 = vmul.f32 %v237_v28, %v237_v28  ;;  %v242_v34 = vmul.f32 %v238_v29, %v238_v29 }
 0x1a0   :  { %v243_v33 = vadd.f32 %v240_v31, %v239_v30 }
 0x1a2   :  { %v244_v35 = vadd.f32 %v243_v33, %v241_v32 }
 0x1a4   :  { %v245_v36 = vadd.f32 %v244_v35, %v242_v34 }
 0x1a6   :  { %246 = vadd.xlane.f32.xlu0 %v245_v36 }
 0x233   :  { %v247_v37 = vpop.xlane.xlu0 %246 }
 0x234   :  { %v248_v38 = vmul.f32 0.001953125, %v247_v37 }
 0x236   :  { %v250_v39 = vadd.f32 1e-05, %v248_v38 }
 0x238   :  { %356 = vrsqrt.f32 %v250_v39 }
 0x242   :  { %v357_v41 = vpop.eup %356 }
 0x243   :  { %v252_v42 = vmul.f32 %v357_v41, %v235_v26  ;;  %v253_v43 = vmul.f32 %v357_v41, %v236_v27  ;;  %v254_v44 = vmul.f32 %v357_v41, %v237_v28  ;;  %v255_v45 = vmul.f32 %v357_v41, %v238_v29 }
 0x245   :  { %v261_v47 = vmul.f32 %v259_v40, %v252_v42  ;;  %v262_v48 = vmul.f32 %v259_v40, %v253_v43  ;;  %v263_v49 = vmul.f32 %v259_v40, %v254_v44  ;;  %v264_v50 = vmul.f32 %v259_v40, %v255_v45 }
 0x247   :  { %v269_v51 = vadd.f32 %v267_v46, %v261_v47  ;;  %v270_v52 = vadd.f32 %v267_v46, %v262_v48  ;;  %v271_v53 = vadd.f32 %v267_v46, %v263_v49  ;;  %v272_v54 = vadd.f32 %v267_v46, %v264_v50 }
 0x249   :  { %v273_v55 = vmax.f32 %v269_v51, 0.0  ;;  %v274_v56 = vmax.f32 %v270_v52, 0.0  ;;  %v275_v57 = vmax.f32 %v271_v53, 0.0  ;;  %v276_v58 = vmax.f32 %v272_v54, 0.0 }
 0x24b   :  { %277 = vst [vmem:[#allocation5] sm:$0xff] %v273_v55  ;;  %278 = vst [vmem:[#allocation5 + $0x8] sm:$0xff] %v274_v56 }
 0x24c   :  { %279 = vst [vmem:[#allocation5 + $0x10] sm:$0xff] %v275_v57  ;;  %280 = vst [vmem:[#allocation5 + $0x18] sm:$0xff] %v276_v58 }
 0x24d   :  { %391 = shalt.err (!%p388_p12)
}
 0x24e   :  { %s392_s5 = scalar_lea.hbm %s466_s3, 512 }
 0x24f   :  { %p393_p13 = scmp.ne.s32.totalorder %s466_s3, %s392_s5  ;;  %p396_p0 = scmp.lt.u32.totalorder %s392_s5, %s466_s3 }
 0x251   :  { %p398_p1 = pnand %p396_p0, %p393_p13 }
 0x253   :  { %401 = shalt.err (!%p398_p1)
}
 0x254   :  { %290 = dma.vmem_to_hbm [thread:$0]  %s288_s2, 512, %s466_s3, [#allocation4]  }
 0x255   :  { %404 = dma.done.wait [#allocation4], 512  }
 0x256   :  { %405 = vsyncadd [#allocation4], 4294966784 }
 0x257   :  { %294 = vsyncpa [#allocation3], 1 }
 0x258   :  { %295 = vsyncpa [#allocation4], 1 }

</bundles_post_ra>
